<compile_context>
chip_gen: v5e
topology: v5e:2x2
jax: 0.10.0
libtpu: 0.0.40
codegen_flags: <defaults>
</compile_context>

<pallas_src>
import functools

import jax
import jax.numpy as jnp
from jax.experimental import pallas as pl
from jax.experimental.pallas import tpu as pltpu

LANE = 128      # TPU lane width (last-dim tiling unit)
SUBLANE = 8     # TPU sublane width (second-to-last dim tiling unit)


def _round_up(x, m):
    return ((x + m - 1) // m) * m


# ----------------------------------------------------------------------------
# Fused Pallas kernel: tiled matmul + BN scale/bias + optional residual + ReLU
# ----------------------------------------------------------------------------
def _mm_bn_act_kernel(*refs, apply_relu, has_residual, multi_k):
    if multi_k:
        *in_refs, o_ref, acc_ref = refs
    else:
        *in_refs, o_ref = refs
        acc_ref = None
    if has_residual:
        x_ref, w_ref, s_ref, b_ref, r_ref = in_refs
    else:
        x_ref, w_ref, s_ref, b_ref = in_refs
        r_ref = None

    def epilogue(acc):
        y = acc * s_ref[...] + b_ref[...]
        if has_residual:
            y = y + r_ref[...].astype(jnp.float32)
        if apply_relu:
            y = jnp.maximum(y, 0.0)
        o_ref[...] = y.astype(o_ref.dtype)

    # bf16 operands, f32 accumulation on the MXU.
    part = jnp.dot(x_ref[...], w_ref[...], preferred_element_type=jnp.float32)

    if not multi_k:
        # Single K step: no accumulator scratch, epilogue straight to the output.
        epilogue(part)
    else:
        k = pl.program_id(2)

        @pl.when(k == 0)
        def _():
            acc_ref[...] = jnp.zeros_like(acc_ref)

        acc_ref[...] += part

        @pl.when(k == pl.num_programs(2) - 1)
        def _():
            epilogue(acc_ref[...])


def matmul_bn_act(x, w, scale, bias, residual=None, relu=True,
                  out_dtype=jnp.bfloat16):
    """y = act((x @ w) * scale + bias [+ residual]).

    x: (M, K) bf16 with K % 128 == 0.   w: (K, N) with N % 128 == 0.
    scale/bias: (N,) f32.               residual: (M, N) (any dtype) or None.
    Returns (M, N) in `out_dtype`.
    """
    M, K = x.shape
    K2, N = w.shape
    assert K == K2 and K % LANE == 0 and N % LANE == 0

    # Generation-friendly tiles: 256 where it divides (v6e/v7x MXU), else 128 (v5e).
    tn = 256 if N % 256 == 0 else 128
    tk = 256 if K % 256 == 0 else 128
    tm = min(256, _round_up(M, SUBLANE))
    Mp = _round_up(M, tm)
    if Mp != M:
        x = jnp.pad(x, ((0, Mp - M), (0, 0)))
        if residual is not None:
            residual = jnp.pad(residual, ((0, Mp - M), (0, 0)))

    num_k = K // tk
    multi_k = num_k > 1

    scale = scale.reshape(1, N).astype(jnp.float32)
    bias = bias.reshape(1, N).astype(jnp.float32)

    in_specs = [
        pl.BlockSpec((tm, tk), lambda i, j, k: (i, k)),
        pl.BlockSpec((tk, tn), lambda i, j, k: (k, j)),
        pl.BlockSpec((1, tn), lambda i, j, k: (0, j)),
        pl.BlockSpec((1, tn), lambda i, j, k: (0, j)),
    ]
    args = [x.astype(jnp.bfloat16), w.astype(jnp.bfloat16), scale, bias]
    if residual is not None:
        in_specs.append(pl.BlockSpec((tm, tn), lambda i, j, k: (i, j)))
        args.append(residual.astype(jnp.bfloat16))

    kernel = functools.partial(_mm_bn_act_kernel, apply_relu=relu,
                               has_residual=residual is not None,
                               multi_k=multi_k)
    scratch = [pltpu.VMEM((tm, tn), jnp.float32)] if multi_k else []

    y = pl.pallas_call(
        kernel,
        out_shape=jax.ShapeDtypeStruct((Mp, N), out_dtype),
        grid_spec=pltpu.PrefetchScalarGridSpec(
            num_scalar_prefetch=0,
            grid=(Mp // tm, N // tn, num_k),
            in_specs=in_specs,
            out_specs=pl.BlockSpec((tm, tn), lambda i, j, k: (i, j)),
            scratch_shapes=scratch,
        ),
        compiler_params=pltpu.CompilerParams(
            dimension_semantics=("parallel", "parallel", "arbitrary"),
        ),
    )(*args)
    return y[:M] if Mp != M else y


# ----------------------------------------------------------------------------
# Conv / BN glue (im2col in bf16; the matmul + epilogue is the Pallas kernel)
# ----------------------------------------------------------------------------
def conv2d_bn_act(x, w, scale, bias, stride, padding, residual=None, relu=True,
                  out_dtype=jnp.bfloat16):
    """2D conv on NHWC input + folded BN + optional residual/ReLU.

    x: (N, H, W, C) bf16. Only the first w.shape[2] channels are used; any extra
       channels (lane padding produced by a previous conv) are sliced off before
       im2col so they never inflate K.
    w: (KH, KW, Cin, Cout) unpadded.  scale/bias: (Cout,) f32.
    residual: (N, Ho, Wo, Cout_p) or None.
    Returns (N, Ho, Wo, Cout_p) with Cout_p = round_up(Cout, 128); padded output
    channels are exactly zero.
    """
    kh, kw, cin, cout = w.shape
    n, h, wd, c_in_x = x.shape
    assert c_in_x >= cin
    if c_in_x > cin:
        x = x[..., :cin]           # drop inert lane padding before building patches

    cout_p = _round_up(cout, LANE)
    ho = (h + 2 * padding - kh) // stride + 1
    wo = (wd + 2 * padding - kw) // stride + 1

    k0 = kh * kw * cin             # true contraction size
    kp = _round_up(k0, LANE)       # pad K only up to the next lane multiple

    # Weights / scale / bias padded with zeros (inert in the matmul / epilogue),
    # making the output lane-dense and K a multiple of 128 by construction.
    wm = jnp.zeros((kp, cout_p), jnp.float32).at[:k0, :cout].set(
        w.reshape(k0, cout))
    scale_p = jnp.zeros((cout_p,), jnp.float32).at[:cout].set(scale)
    bias_p = jnp.zeros((cout_p,), jnp.float32).at[:cout].set(bias)

    if padding:
        xp = jnp.pad(x, ((0, 0), (padding, padding), (padding, padding), (0, 0)))
    else:
        xp = x
    cols = []
    for ki in range(kh):
        for kj in range(kw):
            cols.append(xp[:, ki:ki + stride * ho:stride,
                           kj:kj + stride * wo:stride, :])
    if kp != k0:                   # bake the K padding into the same concat pass
        cols.append(jnp.zeros((n, ho, wo, kp - k0), x.dtype))
    patches = jnp.concatenate(cols, axis=-1).reshape(n * ho * wo, kp)

    r = None if residual is None else residual.reshape(n * ho * wo, cout_p)
    y = matmul_bn_act(patches, wm, scale_p, bias_p, residual=r, relu=relu,
                      out_dtype=out_dtype)
    return y.reshape(n, ho, wo, cout_p)


def fold_bn(gamma, beta, mean, var, eps=1e-5):
    """Fold inference-mode BatchNorm into a per-channel scale/bias."""
    scale = gamma / jnp.sqrt(var + eps)
    bias = beta - mean * scale
    return scale, bias


# ----------------------------------------------------------------------------
# ResBlock18 parameters (deterministic synthetic init) and forward
# ----------------------------------------------------------------------------
def init_resblock18_params(key, in_channel, out_channel, with_shortcut):
    keys = iter(jax.random.split(key, 32))

    def nk():
        return next(keys)

    def conv_w(kh, kw, cin, cout):
        fan_in = kh * kw * cin
        return jax.random.normal(nk(), (kh, kw, cin, cout),
                                 jnp.float32) / jnp.sqrt(float(fan_in))

    def bn(c):
        return dict(
            gamma=1.0 + 0.1 * jax.random.normal(nk(), (c,), jnp.float32),
            beta=0.1 * jax.random.normal(nk(), (c,), jnp.float32),
            mean=0.1 * jax.random.normal(nk(), (c,), jnp.float32),
            var=jax.random.uniform(nk(), (c,), jnp.float32, 0.5, 1.5),
        )

    p = dict(conv1_w=conv_w(3, 3, in_channel, out_channel), bn1=bn(out_channel),
             conv2_w=conv_w(3, 3, out_channel, out_channel), bn2=bn(out_channel))
    if with_shortcut:
        # standard projection shortcut: 1x1 conv (no bias) + BN
        p['sc_w'] = conv_w(1, 1, in_channel, out_channel)
        p['sc_bn'] = bn(out_channel)
    return p


def resblock18_forward(x_nchw, params, stride=1):
    """ResBlock18.forward:
        out = left(x); residual = x if shortcut is None else shortcut(x)
        return relu(out + residual)
    left = conv3x3(stride,p=1,no bias) + BN + ReLU + conv3x3(1,p=1,no bias) + BN
    Input/output are NCHW f32 like the PyTorch module.
    """
    n, cin, h, w = x_nchw.shape
    cout = params['conv1_w'].shape[-1]
    cout_p = _round_up(cout, LANE)
    has_shortcut = 'sc_w' in params

    # NCHW -> NHWC, bf16 (no channel padding here; K padding is handled per-conv).
    x = jnp.transpose(x_nchw, (0, 2, 3, 1)).astype(jnp.bfloat16)

    # left branch, first conv: fused BN + ReLU
    s1, b1 = fold_bn(**params['bn1'])
    h1 = conv2d_bn_act(x, params['conv1_w'], s1, b1, stride=stride, padding=1,
                       relu=True, out_dtype=jnp.bfloat16)

    # residual path
    if has_shortcut:
        ss, bs = fold_bn(**params['sc_bn'])
        residual = conv2d_bn_act(x, params['sc_w'], ss, bs, stride=stride,
                                 padding=0, relu=False, out_dtype=jnp.bfloat16)
    else:
        assert stride == 1 and cin == cout, \
            "identity shortcut requires matching shape (as in the PyTorch module)"
        residual = x
        if cout_p != cout:   # lane-pad to match the conv2 output block (zeros are inert)
            residual = jnp.pad(residual, ((0, 0),) * 3 + ((0, cout_p - cout),))

    # left branch, second conv: fused BN + residual add + ReLU in the epilogue
    s2, b2 = fold_bn(**params['bn2'])
    out = conv2d_bn_act(h1, params['conv2_w'], s2, b2, stride=1, padding=1,
                        residual=residual, relu=True, out_dtype=jnp.float32)

    out = out[..., :cout]                      # drop channel padding
    return jnp.transpose(out, (0, 3, 1, 2))    # back to NCHW


if __name__ == "__main__":
    key = jax.random.PRNGKey(0)
    k_a, k_b, k_x = jax.random.split(key, 3)

    # Block with projection shortcut (4 -> 8 channels, stride 2) followed by an
    # identity block (shortcut=None in the PyTorch module), exercising both paths.
    params_a = init_resblock18_params(k_a, in_channel=4, out_channel=8,
                                      with_shortcut=True)
    params_b = init_resblock18_params(k_b, in_channel=8, out_channel=8,
                                      with_shortcut=False)

    x = jax.random.normal(k_x, (2, 4, 16, 16), jnp.float32)   # NCHW

    @jax.jit
    def fwd(x, pa, pb):
        y = resblock18_forward(x, pa, stride=2)   # (2, 8, 8, 8)
        y = resblock18_forward(y, pb, stride=1)   # (2, 8, 8, 8)
        return y

    out = jax.block_until_ready(fwd(x, params_a, params_b))

    assert out.shape == (2, 8, 8, 8), out.shape
    assert bool(jnp.all(jnp.isfinite(out)))
    print("KERNEL_OK")
</pallas_src>

<mosaic_0001>
module attributes {stable_mosaic.version = 11 : i64} {
  func.func @_mm_bn_act_kernel(%arg0: i32, %arg1: i32, %arg2: i32, %arg3: memref<128x128xbf16, #tpu.memory_space<vmem>>, %arg4: memref<128x128xbf16, #tpu.memory_space<vmem>>, %arg5: memref<1x128xf32, #tpu.memory_space<vmem>>, %arg6: memref<1x128xf32, #tpu.memory_space<vmem>>, %arg7: memref<128x128xbf16, #tpu.memory_space<vmem>>) attributes {dimension_semantics = [#tpu.dimension_semantics<parallel>, #tpu.dimension_semantics<parallel>, #tpu.dimension_semantics<arbitrary>], iteration_bounds = array<i64: 1, 1, 1>, scalar_prefetch = 0 : i64, scratch_operands = 0 : i64, tpu.core_type = #tpu.core_type<tc>, window_params = [{transform_indices = @transform_0, window_bounds = array<i64: 128, 128>}, {transform_indices = @transform_1, window_bounds = array<i64: 128, 128>}, {transform_indices = @transform_2, window_bounds = array<i64: 1, 128>}, {transform_indices = @transform_3, window_bounds = array<i64: 1, 128>}, {transform_indices = @transform_4, window_bounds = array<i64: 128, 128>}]} {
    %c0 = arith.constant 0 : index
    %c0_0 = arith.constant 0 : index
    %0 = vector.load %arg3[%c0, %c0_0] : memref<128x128xbf16, #tpu.memory_space<vmem>>, vector<128x128xbf16>
    %c0_1 = arith.constant 0 : index
    %c0_2 = arith.constant 0 : index
    %1 = vector.load %arg4[%c0_1, %c0_2] : memref<128x128xbf16, #tpu.memory_space<vmem>>, vector<128x128xbf16>
    %cst = arith.constant dense<0.000000e+00> : vector<128x128xf32>
    %2 = tpu.matmul %0, %1, %cst {dimension_numbers = #tpu.dot_dimension_numbers<[1], [0], [0], [1], [0, 0, 1, 1], [], []>} : vector<128x128xbf16>, vector<128x128xbf16>, vector<128x128xf32> -> vector<128x128xf32>
    %c0_3 = arith.constant 0 : index
    %c0_4 = arith.constant 0 : index
    %3 = vector.load %arg5[%c0_3, %c0_4] : memref<1x128xf32, #tpu.memory_space<vmem>>, vector<1x128xf32>
    %4 = vector.broadcast %3 : vector<1x128xf32> to vector<128x128xf32>
    %5 = arith.mulf %2, %4 : vector<128x128xf32>
    %c0_5 = arith.constant 0 : index
    %c0_6 = arith.constant 0 : index
    %6 = vector.load %arg6[%c0_5, %c0_6] : memref<1x128xf32, #tpu.memory_space<vmem>>, vector<1x128xf32>
    %7 = vector.broadcast %6 : vector<1x128xf32> to vector<128x128xf32>
    %8 = arith.addf %5, %7 : vector<128x128xf32>
    %cst_7 = arith.constant 0.000000e+00 : f32
    %9 = vector.broadcast %cst_7 : f32 to vector<128x128xf32>
    %10 = arith.maximumf %8, %9 : vector<128x128xf32>
    %11 = arith.truncf %10 : vector<128x128xf32> to vector<128x128xbf16>
    %c0_8 = arith.constant 0 : index
    %c0_9 = arith.constant 0 : index
    %12 = vector.load %arg7[%c0_8, %c0_9] : memref<128x128xbf16, #tpu.memory_space<vmem>>, vector<128x128xbf16>
    tpu.vector_store %arg7[%c0_8, %c0_9], %11 {strides = array<i32>} : memref<128x128xbf16, #tpu.memory_space<vmem>>, vector<128x128xbf16>,
    return
  }
  func.func @transform_0(%arg0: i32, %arg1: i32, %arg2: i32) -> (i32, i32) {
    %c0_i32 = arith.constant 0 : i32
    return %arg0, %arg2 : i32, i32
  }
  func.func @transform_1(%arg0: i32, %arg1: i32, %arg2: i32) -> (i32, i32) {
    %c0_i32 = arith.constant 0 : i32
    return %arg2, %arg1 : i32, i32
  }
  func.func @transform_2(%arg0: i32, %arg1: i32, %arg2: i32) -> (i32, i32) {
    %c0_i32 = arith.constant 0 : i32
    %c0_i32_0 = arith.constant 0 : i32
    return %c0_i32, %arg1 : i32, i32
  }
  func.func @transform_3(%arg0: i32, %arg1: i32, %arg2: i32) -> (i32, i32) {
    %c0_i32 = arith.constant 0 : i32
    %c0_i32_0 = arith.constant 0 : i32
    return %c0_i32, %arg1 : i32, i32
  }
  func.func @transform_4(%arg0: i32, %arg1: i32, %arg2: i32) -> (i32, i32) {
    %c0_i32 = arith.constant 0 : i32
    return %arg0, %arg1 : i32, i32
  }
}

module attributes {stable_mosaic.version = 11 : i64} {
  func.func @_mm_bn_act_kernel(%arg0: i32, %arg1: i32, %arg2: i32, %arg3: memref<128x128xbf16, #tpu.memory_space<vmem>>, %arg4: memref<128x128xbf16, #tpu.memory_space<vmem>>, %arg5: memref<1x128xf32, #tpu.memory_space<vmem>>, %arg6: memref<1x128xf32, #tpu.memory_space<vmem>>, %arg7: memref<128x128xbf16, #tpu.memory_space<vmem>>) attributes {dimension_semantics = [#tpu.dimension_semantics<parallel>, #tpu.dimension_semantics<parallel>, #tpu.dimension_semantics<arbitrary>], iteration_bounds = array<i64: 1, 1, 1>, scalar_prefetch = 0 : i64, scratch_operands = 0 : i64, tpu.core_type = #tpu.core_type<tc>, window_params = [{transform_indices = @transform_0, window_bounds = array<i64: 128, 128>}, {transform_indices = @transform_1, window_bounds = array<i64: 128, 128>}, {transform_indices = @transform_2, window_bounds = array<i64: 1, 128>}, {transform_indices = @transform_3, window_bounds = array<i64: 1, 128>}, {transform_indices = @transform_4, window_bounds = array<i64: 128, 128>}]} {
    %c0 = arith.constant 0 : index
    %c0_0 = arith.constant 0 : index
    %0 = vector.load %arg3[%c0, %c0_0] : memref<128x128xbf16, #tpu.memory_space<vmem>>, vector<128x128xbf16>
    %c0_1 = arith.constant 0 : index
    %c0_2 = arith.constant 0 : index
    %1 = vector.load %arg4[%c0_1, %c0_2] : memref<128x128xbf16, #tpu.memory_space<vmem>>, vector<128x128xbf16>
    %cst = arith.constant dense<0.000000e+00> : vector<128x128xf32>
    %2 = tpu.matmul %0, %1, %cst {dimension_numbers = #tpu.dot_dimension_numbers<[1], [0], [0], [1], [0, 0, 1, 1], [], []>} : vector<128x128xbf16>, vector<128x128xbf16>, vector<128x128xf32> -> vector<128x128xf32>
    %c0_3 = arith.constant 0 : index
    %c0_4 = arith.constant 0 : index
    %3 = vector.load %arg5[%c0_3, %c0_4] : memref<1x128xf32, #tpu.memory_space<vmem>>, vector<1x128xf32>
    %4 = vector.broadcast %3 : vector<1x128xf32> to vector<128x128xf32>
    %5 = arith.mulf %2, %4 : vector<128x128xf32>
    %c0_5 = arith.constant 0 : index
    %c0_6 = arith.constant 0 : index
    %6 = vector.load %arg6[%c0_5, %c0_6] : memref<1x128xf32, #tpu.memory_space<vmem>>, vector<1x128xf32>
    %7 = vector.broadcast %6 : vector<1x128xf32> to vector<128x128xf32>
    %8 = arith.addf %5, %7 : vector<128x128xf32>
    %9 = arith.truncf %8 : vector<128x128xf32> to vector<128x128xbf16>
    %c0_7 = arith.constant 0 : index
    %c0_8 = arith.constant 0 : index
    %10 = vector.load %arg7[%c0_7, %c0_8] : memref<128x128xbf16, #tpu.memory_space<vmem>>, vector<128x128xbf16>
    tpu.vector_store %arg7[%c0_7, %c0_8], %9 {strides = array<i32>} : memref<128x128xbf16, #tpu.memory_space<vmem>>, vector<128x128xbf16>,
    return
  }
  func.func @transform_0(%arg0: i32, %arg1: i32, %arg2: i32) -> (i32, i32) {
    %c0_i32 = arith.constant 0 : i32
    return %arg0, %arg2 : i32, i32
  }
  func.func @transform_1(%arg0: i32, %arg1: i32, %arg2: i32) -> (i32, i32) {
    %c0_i32 = arith.constant 0 : i32
    return %arg2, %arg1 : i32, i32
  }
  func.func @transform_2(%arg0: i32, %arg1: i32, %arg2: i32) -> (i32, i32) {
    %c0_i32 = arith.constant 0 : i32
    %c0_i32_0 = arith.constant 0 : i32
    return %c0_i32, %arg1 : i32, i32
  }
  func.func @transform_3(%arg0: i32, %arg1: i32, %arg2: i32) -> (i32, i32) {
    %c0_i32 = arith.constant 0 : i32
    %c0_i32_0 = arith.constant 0 : i32
    return %c0_i32, %arg1 : i32, i32
  }
  func.func @transform_4(%arg0: i32, %arg1: i32, %arg2: i32) -> (i32, i32) {
    %c0_i32 = arith.constant 0 : i32
    return %arg0, %arg1 : i32, i32
  }
}

module attributes {stable_mosaic.version = 11 : i64} {
  func.func @_mm_bn_act_kernel(%arg0: i32, %arg1: i32, %arg2: i32, %arg3: memref<128x128xbf16, #tpu.memory_space<vmem>>, %arg4: memref<128x128xbf16, #tpu.memory_space<vmem>>, %arg5: memref<1x128xf32, #tpu.memory_space<vmem>>, %arg6: memref<1x128xf32, #tpu.memory_space<vmem>>, %arg7: memref<128x128xbf16, #tpu.memory_space<vmem>>, %arg8: memref<128x128xf32, #tpu.memory_space<vmem>>) attributes {dimension_semantics = [#tpu.dimension_semantics<parallel>, #tpu.dimension_semantics<parallel>, #tpu.dimension_semantics<arbitrary>], iteration_bounds = array<i64: 1, 1, 1>, scalar_prefetch = 0 : i64, scratch_operands = 0 : i64, tpu.core_type = #tpu.core_type<tc>, window_params = [{transform_indices = @transform_0, window_bounds = array<i64: 128, 128>}, {transform_indices = @transform_1, window_bounds = array<i64: 128, 128>}, {transform_indices = @transform_2, window_bounds = array<i64: 1, 128>}, {transform_indices = @transform_3, window_bounds = array<i64: 1, 128>}, {transform_indices = @transform_4, window_bounds = array<i64: 128, 128>}, {transform_indices = @transform_5, window_bounds = array<i64: 128, 128>}]} {
    %c0 = arith.constant 0 : index
    %c0_0 = arith.constant 0 : index
    %0 = vector.load %arg3[%c0, %c0_0] : memref<128x128xbf16, #tpu.memory_space<vmem>>, vector<128x128xbf16>
    %c0_1 = arith.constant 0 : index
    %c0_2 = arith.constant 0 : index
    %1 = vector.load %arg4[%c0_1, %c0_2] : memref<128x128xbf16, #tpu.memory_space<vmem>>, vector<128x128xbf16>
    %cst = arith.constant dense<0.000000e+00> : vector<128x128xf32>
    %2 = tpu.matmul %0, %1, %cst {dimension_numbers = #tpu.dot_dimension_numbers<[1], [0], [0], [1], [0, 0, 1, 1], [], []>} : vector<128x128xbf16>, vector<128x128xbf16>, vector<128x128xf32> -> vector<128x128xf32>
    %c0_3 = arith.constant 0 : index
    %c0_4 = arith.constant 0 : index
    %3 = vector.load %arg5[%c0_3, %c0_4] : memref<1x128xf32, #tpu.memory_space<vmem>>, vector<1x128xf32>
    %4 = vector.broadcast %3 : vector<1x128xf32> to vector<128x128xf32>
    %5 = arith.mulf %2, %4 : vector<128x128xf32>
    %c0_5 = arith.constant 0 : index
    %c0_6 = arith.constant 0 : index
    %6 = vector.load %arg6[%c0_5, %c0_6] : memref<1x128xf32, #tpu.memory_space<vmem>>, vector<1x128xf32>
    %7 = vector.broadcast %6 : vector<1x128xf32> to vector<128x128xf32>
    %8 = arith.addf %5, %7 : vector<128x128xf32>
    %c0_7 = arith.constant 0 : index
    %c0_8 = arith.constant 0 : index
    %9 = vector.load %arg7[%c0_7, %c0_8] : memref<128x128xbf16, #tpu.memory_space<vmem>>, vector<128x128xbf16>
    %10 = arith.extf %9 : vector<128x128xbf16> to vector<128x128xf32>
    %11 = arith.addf %8, %10 : vector<128x128xf32>
    %cst_9 = arith.constant 0.000000e+00 : f32
    %12 = vector.broadcast %cst_9 : f32 to vector<128x128xf32>
    %13 = arith.maximumf %11, %12 : vector<128x128xf32>
    %c0_10 = arith.constant 0 : index
    %c0_11 = arith.constant 0 : index
    %14 = vector.load %arg8[%c0_10, %c0_11] : memref<128x128xf32, #tpu.memory_space<vmem>>, vector<128x128xf32>
    tpu.vector_store %arg8[%c0_10, %c0_11], %13 {strides = array<i32>} : memref<128x128xf32, #tpu.memory_space<vmem>>, vector<128x128xf32>,
    return
  }
  func.func @transform_0(%arg0: i32, %arg1: i32, %arg2: i32) -> (i32, i32) {
    %c0_i32 = arith.constant 0 : i32
    return %arg0, %arg2 : i32, i32
  }
  func.func @transform_1(%arg0: i32, %arg1: i32, %arg2: i32) -> (i32, i32) {
    %c0_i32 = arith.constant 0 : i32
    return %arg2, %arg1 : i32, i32
  }
  func.func @transform_2(%arg0: i32, %arg1: i32, %arg2: i32) -> (i32, i32) {
    %c0_i32 = arith.constant 0 : i32
    %c0_i32_0 = arith.constant 0 : i32
    return %c0_i32, %arg1 : i32, i32
  }
  func.func @transform_3(%arg0: i32, %arg1: i32, %arg2: i32) -> (i32, i32) {
    %c0_i32 = arith.constant 0 : i32
    %c0_i32_0 = arith.constant 0 : i32
    return %c0_i32, %arg1 : i32, i32
  }
  func.func @transform_4(%arg0: i32, %arg1: i32, %arg2: i32) -> (i32, i32) {
    %c0_i32 = arith.constant 0 : i32
    return %arg0, %arg1 : i32, i32
  }
  func.func @transform_5(%arg0: i32, %arg1: i32, %arg2: i32) -> (i32, i32) {
    %c0_i32 = arith.constant 0 : i32
    return %arg0, %arg1 : i32, i32
  }
}

</mosaic_0001>

<bundles_post_ra>
// kernel: fwd.5
= control target key start
LH: loop header
LB: loop body
LE: loop exit
PB: predicated region body
PF: predicated region fallthrough
CT: control target
= control target key end

     0   :  { %s578_s1 = inlined_call_operand.vmem [shape: bf16[128,128], index: 1, kind: input, shape index: {}]   ;;  %s579_s2 = inlined_call_operand.vmem [shape: f32[1,128], index: 2, kind: input, shape index: {}]   ;;  %s580_s3 = inlined_call_operand.vmem [shape: f32[1,128], index: 3, kind: input, shape index: {}]   ;;  %s581_s0 = inlined_call_operand.vmem [shape: bf16[128,128], index: 0, kind: input, shape index: {}]   ;;  %s582_s4 = inlined_call_operand.vmem [shape: bf16[128,128], index: 4, kind: output, shape index: {}]  }
   0x1   :  { %v365_v0 = vld [vmem:[%s578_s1 + $0x38] sm:$0xff]  ;;  %v364_v1 = vld [vmem:[%s578_s1 + $0x30] sm:$0xff]  ;;  %v363_v2 = vld [vmem:[%s578_s1 + $0x28] sm:$0xff] }
   0x2   :  { %145 = vmatpush.bf16.msra.mxu0 %v365_v0  ;;  %413 = vmatpush.bf16.msra.mxu1 %v365_v0  ;;  %v362_v3 = vld [vmem:[%s578_s1 + $0x20] sm:$0xff]  ;;  %v361_v4 = vld [vmem:[%s578_s1 + $0x18] sm:$0xff]  ;;  %v360_v5 = vld [vmem:[%s578_s1 + $0x10] sm:$0xff] }
   0x3   :  { %414 = vmatpush.bf16.msra.mxu2 %v365_v0  ;;  %415 = vmatpush.bf16.msra.mxu3 %v365_v0  ;;  %v359_v6 = vld [vmem:[%s578_s1 + $0x8] sm:$0xff]  ;;  %v358_v7 = vld [vmem:[%s578_s1] sm:$0xff]  ;;  %v352_v9 = vld [vmem:[%s581_s0 + $0x10] sm:$0xff] }
   0x4   :  { %v350_v8 = vld [vmem:[%s581_s0] sm:$0xff]  ;;  %v356_v11 = vld [vmem:[%s581_s0 + $0x30] sm:$0xff]  ;;  %v351_v12 = vld [vmem:[%s581_s0 + $0x8] sm:$0xff] }
   0x5   :  { %v354_v10 = vld [vmem:[%s581_s0 + $0x20] sm:$0xff]  ;;  %v353_v13 = vld [vmem:[%s581_s0 + $0x18] sm:$0xff]  ;;  %v355_v14 = vld [vmem:[%s581_s0 + $0x28] sm:$0xff] }
   0x6   :  { %146 = vmatpush.bf16.msra.mxu0 %v364_v1  ;;  %416 = vmatpush.bf16.msra.mxu1 %v364_v1  ;;  %v357_v15 = vld [vmem:[%s581_s0 + $0x38] sm:$0xff]  ;;  %v515_v18 = vld [vmem:[%s579_s2] ss:$0 sm:$0xff] }
   0x7   :  { %417 = vmatpush.bf16.msra.mxu2 %v364_v1  ;;  %418 = vmatpush.bf16.msra.mxu3 %v364_v1  ;;  %v521_v20 = vld [vmem:[%s580_s3] ss:$0 sm:$0xff] }
   0xa   :  { %147 = vmatpush.bf16.msra.mxu0 %v363_v2  ;;  %419 = vmatpush.bf16.msra.mxu1 %v363_v2 }
   0xb   :  { %420 = vmatpush.bf16.msra.mxu2 %v363_v2  ;;  %421 = vmatpush.bf16.msra.mxu3 %v363_v2 }
   0xe   :  { %148 = vmatpush.bf16.msra.mxu0 %v362_v3  ;;  %422 = vmatpush.bf16.msra.mxu1 %v362_v3 }
   0xf   :  { %423 = vmatpush.bf16.msra.mxu2 %v362_v3  ;;  %424 = vmatpush.bf16.msra.mxu3 %v362_v3 }
  0x12   :  { %149 = vmatpush.bf16.msra.mxu0 %v361_v4  ;;  %425 = vmatpush.bf16.msra.mxu1 %v361_v4 }
  0x13   :  { %426 = vmatpush.bf16.msra.mxu2 %v361_v4  ;;  %427 = vmatpush.bf16.msra.mxu3 %v361_v4 }
  0x16   :  { %150 = vmatpush.bf16.msra.mxu0 %v360_v5  ;;  %428 = vmatpush.bf16.msra.mxu1 %v360_v5 }
  0x17   :  { %429 = vmatpush.bf16.msra.mxu2 %v360_v5  ;;  %430 = vmatpush.bf16.msra.mxu3 %v360_v5 }
  0x1a   :  { %151 = vmatpush.bf16.msra.mxu0 %v359_v6  ;;  %431 = vmatpush.bf16.msra.mxu1 %v359_v6 }
  0x1b   :  { %432 = vmatpush.bf16.msra.mxu2 %v359_v6  ;;  %433 = vmatpush.bf16.msra.mxu3 %v359_v6 }
  0x1e   :  { %152 = vmatpush.bf16.msra.mxu0 %v358_v7  ;;  %434 = vmatpush.bf16.msra.mxu1 %v358_v7 }
  0x1f   :  { %435 = vmatpush.bf16.msra.mxu2 %v358_v7  ;;  %436 = vmatpush.bf16.msra.mxu3 %v358_v7 }
  0x21   :  { %153 = vmatmul.bf16.vlgmr.msra.gmra.mxu0 %v350_v8  ;;  %163 = vmatmul.bf16.vlgmr.msra.gmra.mxu1 %v352_v9 }
  0x22   :  { %173 = vmatmul.bf16.vlgmr.msra.gmra.mxu2 %v354_v10  ;;  %183 = vmatmul.bf16.vlgmr.msra.gmra.mxu3 %v356_v11 }
  0x31   :  { %158 = vmatmul.bf16.gmra.mxu0 %v351_v12  ;;  %168 = vmatmul.bf16.gmra.mxu1 %v353_v13 }
  0x32   :  { %178 = vmatmul.bf16.gmra.mxu2 %v355_v14  ;;  %188 = vmatmul.bf16.gmra.mxu3 %v357_v15 }
  0x9e   :  { %v154_v16 = vpop.f32.mrf.mxu0  ;;  %v164_v17 = vpop.f32.mrf.mxu1 }
  0x9f   :  { %v198_v19 = vmul.f32 %v515_v18, %v154_v16  ;;  %v202_v21 = vmul.f32 %v515_v18, %v164_v17 }
  0xa1   :  { %v218_v26 = vadd.f32 %v521_v20, %v198_v19  ;;  %v222_v27 = vadd.f32 %v521_v20, %v202_v21 }
  0xa3   :  { %v234_v34 = vmax.f32 %v218_v26, 0.0  ;;  %v238_v35 = vmax.f32 %v222_v27, 0.0 }
  0xa5   :  { %v174_v22 = vpop.f32.mrf.mxu2  ;;  %v184_v23 = vpop.f32.mrf.mxu3 }
  0xa6   :  { %v156_v24 = vpop.f32.mrf.mxu0  ;;  %v166_v25 = vpop.f32.mrf.mxu1  ;;  %v206_v32 = vmul.f32 %v515_v18, %v174_v22  ;;  %v210_v33 = vmul.f32 %v515_v18, %v184_v23 }
  0xa7   :  { %v199_v28 = vmul.f32 %v515_v18, %v156_v24  ;;  %v203_v29 = vmul.f32 %v515_v18, %v166_v25 }
  0xa8   :  { %v226_v42 = vadd.f32 %v521_v20, %v206_v32  ;;  %v230_v43 = vadd.f32 %v521_v20, %v210_v33 }
  0xa9   :  { %v219_v30 = vadd.f32 %v521_v20, %v199_v28  ;;  %v223_v31 = vadd.f32 %v521_v20, %v203_v29 }
  0xaa   :  { %v242_v50 = vmax.f32 %v226_v42, 0.0  ;;  %v246_v51 = vmax.f32 %v230_v43, 0.0 }
  0xab   :  { %v235_v36 = vmax.f32 %v219_v30, 0.0  ;;  %v239_v37 = vmax.f32 %v223_v31, 0.0 }
  0xad   :  { %v369_v38 = vpack.c.bf16 %v235_v36, %v234_v34  ;;  %v379_v39 = vpack.c.bf16 %v239_v37, %v238_v35  ;;  %v176_v40 = vpop.f32.mrf.mxu2  ;;  %v186_v41 = vpop.f32.mrf.mxu3 }
  0xae   :  { %v207_v44 = vmul.f32 %v515_v18, %v176_v40  ;;  %v211_v45 = vmul.f32 %v515_v18, %v186_v41  ;;  %v159_v46 = vpop.f32.mrf.mxu0  ;;  %v169_v47 = vpop.f32.mrf.mxu1 }
  0xaf   :  { %370 = vst [vmem:[%s582_s4] sm:$0xff] %v369_v38   ;;  %v200_v54 = vmul.f32 %v515_v18, %v159_v46  ;;  %v204_v55 = vmul.f32 %v515_v18, %v169_v47 }
  0xb0   :  { %407 = vst [vmem:[%s582_s4 + $0x10] sm:$0xff] %v379_v39   ;;  %v227_v48 = vadd.f32 %v521_v20, %v207_v44  ;;  %v231_v49 = vadd.f32 %v521_v20, %v211_v45 }
  0xb1   :  { %v220_v62 = vadd.f32 %v521_v20, %v200_v54  ;;  %v224_v63 = vadd.f32 %v521_v20, %v204_v55 }
  0xb2   :  { %v243_v52 = vmax.f32 %v227_v48, 0.0  ;;  %v247_v53 = vmax.f32 %v231_v49, 0.0 }
  0xb3   :  { %v236_v6 = vmax.f32 %v220_v62, 0.0  ;;  %v240_v7 = vmax.f32 %v224_v63, 0.0 }
  0xb4   :  { %v389_v56 = vpack.c.bf16 %v243_v52, %v242_v50  ;;  %v399_v57 = vpack.c.bf16 %v247_v53, %v246_v51 }
  0xb5   :  { %v179_v58 = vpop.f32.mrf.mxu2  ;;  %v189_v59 = vpop.f32.mrf.mxu3 }
  0xb6   :  { %409 = vst [vmem:[%s582_s4 + $0x20] sm:$0xff] %v389_v56   ;;  %v161_v60 = vpop.f32.mrf.mxu0  ;;  %v171_v61 = vpop.f32.mrf.mxu1  ;;  %v208_v4 = vmul.f32 %v515_v18, %v179_v58  ;;  %v212_v5 = vmul.f32 %v515_v18, %v189_v59 }
  0xb7   :  { %411 = vst [vmem:[%s582_s4 + $0x30] sm:$0xff] %v399_v57   ;;  %v201_v0 = vmul.f32 %v515_v18, %v161_v60  ;;  %v205_v1 = vmul.f32 %v515_v18, %v171_v61 }
  0xb8   :  { %v228_v14 = vadd.f32 %v521_v20, %v208_v4  ;;  %v232_v15 = vadd.f32 %v521_v20, %v212_v5 }
  0xb9   :  { %v221_v2 = vadd.f32 %v521_v20, %v201_v0  ;;  %v225_v3 = vadd.f32 %v521_v20, %v205_v1 }
  0xba   :  { %v244_v22 = vmax.f32 %v228_v14, 0.0  ;;  %v248_v23 = vmax.f32 %v232_v15, 0.0 }
  0xbb   :  { %v237_v8 = vmax.f32 %v221_v2, 0.0  ;;  %v241_v9 = vmax.f32 %v225_v3, 0.0 }
  0xbd   :  { %v374_v10 = vpack.c.bf16 %v237_v8, %v236_v6  ;;  %v384_v11 = vpack.c.bf16 %v241_v9, %v240_v7  ;;  %v181_v12 = vpop.f32.mrf.mxu2  ;;  %v191_v13 = vpop.f32.mrf.mxu3 }
  0xbe   :  { %v209_v16 = vmul.f32 %v515_v18, %v181_v12  ;;  %v213_v17 = vmul.f32 %v515_v18, %v191_v13 }
  0xbf   :  { %406 = vst [vmem:[%s582_s4 + $0x8] sm:$0xff] %v374_v10  }
  0xc0   :  { %408 = vst [vmem:[%s582_s4 + $0x18] sm:$0xff] %v384_v11   ;;  %v229_v19 = vadd.f32 %v521_v20, %v209_v16  ;;  %v233_v21 = vadd.f32 %v521_v20, %v213_v17 }
  0xc2   :  { %v245_v24 = vmax.f32 %v229_v19, 0.0  ;;  %v249_v25 = vmax.f32 %v233_v21, 0.0 }
  0xc4   :  { %v394_v26 = vpack.c.bf16 %v245_v24, %v244_v22  ;;  %v404_v27 = vpack.c.bf16 %v249_v25, %v248_v23 }
  0xc6   :  { %410 = vst [vmem:[%s582_s4 + $0x28] sm:$0xff] %v394_v26  }
  0xc7   :  { %412 = vst [vmem:[%s582_s4 + $0x38] sm:$0xff] %v404_v27  }

// kernel: fwd.6
= control target key start
LH: loop header
LB: loop body
LE: loop exit
PB: predicated region body
PF: predicated region fallthrough
CT: control target
= control target key end

     0   :  { %s526_s1 = inlined_call_operand.vmem [shape: bf16[128,128], index: 1, kind: input, shape index: {}]   ;;  %s527_s2 = inlined_call_operand.vmem [shape: f32[1,128], index: 2, kind: input, shape index: {}]   ;;  %s528_s3 = inlined_call_operand.vmem [shape: f32[1,128], index: 3, kind: input, shape index: {}]   ;;  %s529_s0 = inlined_call_operand.vmem [shape: bf16[128,128], index: 0, kind: input, shape index: {}]   ;;  %s530_s4 = inlined_call_operand.vmem [shape: bf16[128,128], index: 4, kind: output, shape index: {}]  }
   0x1   :  { %v349_v0 = vld [vmem:[%s526_s1 + $0x38] sm:$0xff]  ;;  %v348_v1 = vld [vmem:[%s526_s1 + $0x30] sm:$0xff]  ;;  %v347_v2 = vld [vmem:[%s526_s1 + $0x28] sm:$0xff] }
   0x2   :  { %145 = vmatpush.bf16.msra.mxu0 %v349_v0  ;;  %397 = vmatpush.bf16.msra.mxu1 %v349_v0  ;;  %v346_v3 = vld [vmem:[%s526_s1 + $0x20] sm:$0xff]  ;;  %v345_v4 = vld [vmem:[%s526_s1 + $0x18] sm:$0xff]  ;;  %v344_v5 = vld [vmem:[%s526_s1 + $0x10] sm:$0xff] }
   0x3   :  { %398 = vmatpush.bf16.msra.mxu2 %v349_v0  ;;  %399 = vmatpush.bf16.msra.mxu3 %v349_v0  ;;  %v343_v6 = vld [vmem:[%s526_s1 + $0x8] sm:$0xff]  ;;  %v342_v7 = vld [vmem:[%s526_s1] sm:$0xff]  ;;  %v336_v9 = vld [vmem:[%s529_s0 + $0x10] sm:$0xff] }
   0x4   :  { %v334_v8 = vld [vmem:[%s529_s0] sm:$0xff]  ;;  %v340_v11 = vld [vmem:[%s529_s0 + $0x30] sm:$0xff]  ;;  %v335_v12 = vld [vmem:[%s529_s0 + $0x8] sm:$0xff] }
   0x5   :  { %v338_v10 = vld [vmem:[%s529_s0 + $0x20] sm:$0xff]  ;;  %v337_v13 = vld [vmem:[%s529_s0 + $0x18] sm:$0xff]  ;;  %v339_v14 = vld [vmem:[%s529_s0 + $0x28] sm:$0xff] }
   0x6   :  { %146 = vmatpush.bf16.msra.mxu0 %v348_v1  ;;  %400 = vmatpush.bf16.msra.mxu1 %v348_v1  ;;  %v341_v15 = vld [vmem:[%s529_s0 + $0x38] sm:$0xff]  ;;  %v421_v18 = vld [vmem:[%s527_s2] ss:$0 sm:$0xff] }
   0x7   :  { %401 = vmatpush.bf16.msra.mxu2 %v348_v1  ;;  %402 = vmatpush.bf16.msra.mxu3 %v348_v1  ;;  %v422_v20 = vld [vmem:[%s528_s3] ss:$0 sm:$0xff] }
   0xa   :  { %147 = vmatpush.bf16.msra.mxu0 %v347_v2  ;;  %403 = vmatpush.bf16.msra.mxu1 %v347_v2 }
   0xb   :  { %404 = vmatpush.bf16.msra.mxu2 %v347_v2  ;;  %405 = vmatpush.bf16.msra.mxu3 %v347_v2 }
   0xe   :  { %148 = vmatpush.bf16.msra.mxu0 %v346_v3  ;;  %406 = vmatpush.bf16.msra.mxu1 %v346_v3 }
   0xf   :  { %407 = vmatpush.bf16.msra.mxu2 %v346_v3  ;;  %408 = vmatpush.bf16.msra.mxu3 %v346_v3 }
  0x12   :  { %149 = vmatpush.bf16.msra.mxu0 %v345_v4  ;;  %409 = vmatpush.bf16.msra.mxu1 %v345_v4 }
  0x13   :  { %410 = vmatpush.bf16.msra.mxu2 %v345_v4  ;;  %411 = vmatpush.bf16.msra.mxu3 %v345_v4 }
  0x16   :  { %150 = vmatpush.bf16.msra.mxu0 %v344_v5  ;;  %412 = vmatpush.bf16.msra.mxu1 %v344_v5 }
  0x17   :  { %413 = vmatpush.bf16.msra.mxu2 %v344_v5  ;;  %414 = vmatpush.bf16.msra.mxu3 %v344_v5 }
  0x1a   :  { %151 = vmatpush.bf16.msra.mxu0 %v343_v6  ;;  %415 = vmatpush.bf16.msra.mxu1 %v343_v6 }
  0x1b   :  { %416 = vmatpush.bf16.msra.mxu2 %v343_v6  ;;  %417 = vmatpush.bf16.msra.mxu3 %v343_v6 }
  0x1e   :  { %152 = vmatpush.bf16.msra.mxu0 %v342_v7  ;;  %418 = vmatpush.bf16.msra.mxu1 %v342_v7 }
  0x1f   :  { %419 = vmatpush.bf16.msra.mxu2 %v342_v7  ;;  %420 = vmatpush.bf16.msra.mxu3 %v342_v7 }
  0x21   :  { %153 = vmatmul.bf16.vlgmr.msra.gmra.mxu0 %v334_v8  ;;  %163 = vmatmul.bf16.vlgmr.msra.gmra.mxu1 %v336_v9 }
  0x22   :  { %173 = vmatmul.bf16.vlgmr.msra.gmra.mxu2 %v338_v10  ;;  %183 = vmatmul.bf16.vlgmr.msra.gmra.mxu3 %v340_v11 }
  0x31   :  { %158 = vmatmul.bf16.gmra.mxu0 %v335_v12  ;;  %168 = vmatmul.bf16.gmra.mxu1 %v337_v13 }
  0x32   :  { %178 = vmatmul.bf16.gmra.mxu2 %v339_v14  ;;  %188 = vmatmul.bf16.gmra.mxu3 %v341_v15 }
  0x9e   :  { %v154_v16 = vpop.f32.mrf.mxu0  ;;  %v164_v17 = vpop.f32.mrf.mxu1 }
  0x9f   :  { %v198_v19 = vmul.f32 %v421_v18, %v154_v16  ;;  %v202_v21 = vmul.f32 %v421_v18, %v164_v17 }
  0xa1   :  { %v218_v28 = vadd.f32 %v422_v20, %v198_v19  ;;  %v222_v29 = vadd.f32 %v422_v20, %v202_v21 }
  0xa5   :  { %v174_v22 = vpop.f32.mrf.mxu2  ;;  %v184_v23 = vpop.f32.mrf.mxu3 }
  0xa6   :  { %v156_v24 = vpop.f32.mrf.mxu0  ;;  %v166_v25 = vpop.f32.mrf.mxu1  ;;  %v206_v34 = vmul.f32 %v421_v18, %v174_v22  ;;  %v210_v35 = vmul.f32 %v421_v18, %v184_v23 }
  0xa7   :  { %v199_v26 = vmul.f32 %v421_v18, %v156_v24  ;;  %v203_v27 = vmul.f32 %v421_v18, %v166_v25 }
  0xa8   :  { %v226_v42 = vadd.f32 %v422_v20, %v206_v34  ;;  %v230_v43 = vadd.f32 %v422_v20, %v210_v35 }
  0xa9   :  { %v219_v30 = vadd.f32 %v422_v20, %v199_v26  ;;  %v223_v31 = vadd.f32 %v422_v20, %v203_v27 }
  0xab   :  { %v353_v32 = vpack.c.bf16 %v219_v30, %v218_v28  ;;  %v363_v33 = vpack.c.bf16 %v223_v31, %v222_v29 }
  0xad   :  { %354 = vst [vmem:[%s530_s4] sm:$0xff] %v353_v32   ;;  %v176_v36 = vpop.f32.mrf.mxu2  ;;  %v186_v37 = vpop.f32.mrf.mxu3 }
  0xae   :  { %391 = vst [vmem:[%s530_s4 + $0x10] sm:$0xff] %v363_v33   ;;  %v207_v38 = vmul.f32 %v421_v18, %v176_v36  ;;  %v211_v39 = vmul.f32 %v421_v18, %v186_v37  ;;  %v159_v40 = vpop.f32.mrf.mxu0  ;;  %v169_v41 = vpop.f32.mrf.mxu1 }
  0xaf   :  { %v200_v48 = vmul.f32 %v421_v18, %v159_v40  ;;  %v204_v49 = vmul.f32 %v421_v18, %v169_v41 }
  0xb0   :  { %v227_v44 = vadd.f32 %v422_v20, %v207_v38  ;;  %v231_v45 = vadd.f32 %v422_v20, %v211_v39 }
  0xb1   :  { %v220_v56 = vadd.f32 %v422_v20, %v200_v48  ;;  %v224_v57 = vadd.f32 %v422_v20, %v204_v49 }
  0xb2   :  { %v373_v46 = vpack.c.bf16 %v227_v44, %v226_v42  ;;  %v383_v47 = vpack.c.bf16 %v231_v45, %v230_v43 }
  0xb4   :  { %393 = vst [vmem:[%s530_s4 + $0x20] sm:$0xff] %v373_v46  }
  0xb5   :  { %395 = vst [vmem:[%s530_s4 + $0x30] sm:$0xff] %v383_v47   ;;  %v179_v50 = vpop.f32.mrf.mxu2  ;;  %v189_v51 = vpop.f32.mrf.mxu3 }
  0xb6   :  { %v161_v52 = vpop.f32.mrf.mxu0  ;;  %v171_v53 = vpop.f32.mrf.mxu1  ;;  %v208_v62 = vmul.f32 %v421_v18, %v179_v50  ;;  %v212_v63 = vmul.f32 %v421_v18, %v189_v51 }
  0xb7   :  { %v201_v54 = vmul.f32 %v421_v18, %v161_v52  ;;  %v205_v55 = vmul.f32 %v421_v18, %v171_v53 }
  0xb8   :  { %v228_v4 = vadd.f32 %v422_v20, %v208_v62  ;;  %v232_v5 = vadd.f32 %v422_v20, %v212_v63 }
  0xb9   :  { %v221_v58 = vadd.f32 %v422_v20, %v201_v54  ;;  %v225_v59 = vadd.f32 %v422_v20, %v205_v55 }
  0xbb   :  { %v358_v60 = vpack.c.bf16 %v221_v58, %v220_v56  ;;  %v368_v61 = vpack.c.bf16 %v225_v59, %v224_v57 }
  0xbd   :  { %390 = vst [vmem:[%s530_s4 + $0x8] sm:$0xff] %v358_v60   ;;  %v181_v0 = vpop.f32.mrf.mxu2  ;;  %v191_v1 = vpop.f32.mrf.mxu3 }
  0xbe   :  { %392 = vst [vmem:[%s530_s4 + $0x18] sm:$0xff] %v368_v61   ;;  %v209_v2 = vmul.f32 %v421_v18, %v181_v0  ;;  %v213_v3 = vmul.f32 %v421_v18, %v191_v1 }
  0xc0   :  { %v229_v6 = vadd.f32 %v422_v20, %v209_v2  ;;  %v233_v7 = vadd.f32 %v422_v20, %v213_v3 }
  0xc2   :  { %v378_v8 = vpack.c.bf16 %v229_v6, %v228_v4  ;;  %v388_v9 = vpack.c.bf16 %v233_v7, %v232_v5 }
  0xc4   :  { %394 = vst [vmem:[%s530_s4 + $0x28] sm:$0xff] %v378_v8  }
  0xc5   :  { %396 = vst [vmem:[%s530_s4 + $0x38] sm:$0xff] %v388_v9  }

// kernel: fwd.7
= control target key start
LH: loop header
LB: loop body
LE: loop exit
PB: predicated region body
PF: predicated region fallthrough
CT: control target
= control target key end

     0   :  { %s658_s1 = inlined_call_operand.vmem [shape: bf16[128,128], index: 1, kind: input, shape index: {}]   ;;  %s659_s2 = inlined_call_operand.vmem [shape: f32[1,128], index: 2, kind: input, shape index: {}]   ;;  %s660_s3 = inlined_call_operand.vmem [shape: f32[1,128], index: 3, kind: input, shape index: {}]   ;;  %s661_s0 = inlined_call_operand.vmem [shape: bf16[128,128], index: 0, kind: input, shape index: {}]   ;;  %s662_s4 = inlined_call_operand.vmem [shape: bf16[128,128], index: 4, kind: input, shape index: {}]   ;;  %s663_s5 = inlined_call_operand.vmem [shape: f32[128,128], index: 5, kind: output, shape index: {}]  }
   0x1   :  { %v400_v0 = vld [vmem:[%s658_s1 + $0x38] sm:$0xff]  ;;  %v399_v1 = vld [vmem:[%s658_s1 + $0x30] sm:$0xff]  ;;  %v398_v2 = vld [vmem:[%s658_s1 + $0x28] sm:$0xff] }
   0x2   :  { %148 = vmatpush.bf16.msra.mxu0 %v400_v0  ;;  %440 = vmatpush.bf16.msra.mxu1 %v400_v0  ;;  %v397_v3 = vld [vmem:[%s658_s1 + $0x20] sm:$0xff]  ;;  %v396_v4 = vld [vmem:[%s658_s1 + $0x18] sm:$0xff]  ;;  %v395_v5 = vld [vmem:[%s658_s1 + $0x10] sm:$0xff] }
   0x3   :  { %441 = vmatpush.bf16.msra.mxu2 %v400_v0  ;;  %442 = vmatpush.bf16.msra.mxu3 %v400_v0  ;;  %v394_v6 = vld [vmem:[%s658_s1 + $0x8] sm:$0xff]  ;;  %v393_v7 = vld [vmem:[%s658_s1] sm:$0xff]  ;;  %v387_v9 = vld [vmem:[%s661_s0 + $0x10] sm:$0xff] }
   0x4   :  { %v385_v8 = vld [vmem:[%s661_s0] sm:$0xff]  ;;  %v391_v11 = vld [vmem:[%s661_s0 + $0x30] sm:$0xff]  ;;  %v386_v12 = vld [vmem:[%s661_s0 + $0x8] sm:$0xff] }
   0x5   :  { %v389_v10 = vld [vmem:[%s661_s0 + $0x20] sm:$0xff]  ;;  %v388_v13 = vld [vmem:[%s661_s0 + $0x18] sm:$0xff]  ;;  %v390_v14 = vld [vmem:[%s661_s0 + $0x28] sm:$0xff] }
   0x6   :  { %149 = vmatpush.bf16.msra.mxu0 %v399_v1  ;;  %443 = vmatpush.bf16.msra.mxu1 %v399_v1  ;;  %v392_v15 = vld [vmem:[%s661_s0 + $0x38] sm:$0xff]  ;;  %v547_v16 = vld [vmem:[%s659_s2] ss:$0 sm:$0xff]  ;;  %v434_v18 = vld [vmem:[%s662_s4 + $0x10] sm:$0xff]  }
   0x7   :  { %444 = vmatpush.bf16.msra.mxu2 %v399_v1  ;;  %445 = vmatpush.bf16.msra.mxu3 %v399_v1  ;;  %v402_v17 = vld [vmem:[%s662_s4] sm:$0xff]   ;;  %v411_v25 = vunpack.c.l.bf16 %v434_v18  ;;  %v438_v31 = vld [vmem:[%s662_s4 + $0x30] sm:$0xff]   ;;  %v412_v45 = vunpack.c.h.bf16 %v434_v18  ;;  %v433_v56 = vld [vmem:[%s662_s4 + $0x8] sm:$0xff]  }
   0x8   :  { %v558_v19 = vld [vmem:[%s660_s3] ss:$0 sm:$0xff]  ;;  %v403_v23 = vunpack.c.l.bf16 %v402_v17  ;;  %v427_v39 = vunpack.c.l.bf16 %v438_v31  ;;  %v404_v43 = vunpack.c.h.bf16 %v402_v17  ;;  %v435_v57 = vld [vmem:[%s662_s4 + $0x18] sm:$0xff]   ;;  %v428_v1 = vunpack.c.h.bf16 %v438_v31  ;;  %v437_v17 = vld [vmem:[%s662_s4 + $0x28] sm:$0xff]  }
   0x9   :  { %v436_v30 = vld [vmem:[%s662_s4 + $0x20] sm:$0xff]   ;;  %v439_v18 = vld [vmem:[%s662_s4 + $0x38] sm:$0xff]  }
   0xa   :  { %150 = vmatpush.bf16.msra.mxu0 %v398_v2  ;;  %446 = vmatpush.bf16.msra.mxu1 %v398_v2  ;;  %v419_v37 = vunpack.c.l.bf16 %v436_v30  ;;  %v420_v63 = vunpack.c.h.bf16 %v436_v30 }
   0xb   :  { %447 = vmatpush.bf16.msra.mxu2 %v398_v2  ;;  %448 = vmatpush.bf16.msra.mxu3 %v398_v2 }
   0xe   :  { %151 = vmatpush.bf16.msra.mxu0 %v397_v3  ;;  %449 = vmatpush.bf16.msra.mxu1 %v397_v3 }
   0xf   :  { %450 = vmatpush.bf16.msra.mxu2 %v397_v3  ;;  %451 = vmatpush.bf16.msra.mxu3 %v397_v3 }
  0x12   :  { %152 = vmatpush.bf16.msra.mxu0 %v396_v4  ;;  %452 = vmatpush.bf16.msra.mxu1 %v396_v4 }
  0x13   :  { %453 = vmatpush.bf16.msra.mxu2 %v396_v4  ;;  %454 = vmatpush.bf16.msra.mxu3 %v396_v4 }
  0x16   :  { %153 = vmatpush.bf16.msra.mxu0 %v395_v5  ;;  %455 = vmatpush.bf16.msra.mxu1 %v395_v5 }
  0x17   :  { %456 = vmatpush.bf16.msra.mxu2 %v395_v5  ;;  %457 = vmatpush.bf16.msra.mxu3 %v395_v5  ;;  %v407_v5 = vunpack.c.l.bf16 %v433_v56 }
  0x1a   :  { %154 = vmatpush.bf16.msra.mxu0 %v394_v6  ;;  %458 = vmatpush.bf16.msra.mxu1 %v394_v6 }
  0x1b   :  { %459 = vmatpush.bf16.msra.mxu2 %v394_v6  ;;  %460 = vmatpush.bf16.msra.mxu3 %v394_v6 }
  0x1e   :  { %155 = vmatpush.bf16.msra.mxu0 %v393_v7  ;;  %461 = vmatpush.bf16.msra.mxu1 %v393_v7 }
  0x1f   :  { %462 = vmatpush.bf16.msra.mxu2 %v393_v7  ;;  %463 = vmatpush.bf16.msra.mxu3 %v393_v7  ;;  %v415_v7 = vunpack.c.l.bf16 %v435_v57 }
  0x21   :  { %156 = vmatmul.bf16.vlgmr.msra.gmra.mxu0 %v385_v8  ;;  %166 = vmatmul.bf16.vlgmr.msra.gmra.mxu1 %v387_v9 }
  0x22   :  { %176 = vmatmul.bf16.vlgmr.msra.gmra.mxu2 %v389_v10  ;;  %186 = vmatmul.bf16.vlgmr.msra.gmra.mxu3 %v391_v11 }
  0x31   :  { %161 = vmatmul.bf16.gmra.mxu0 %v386_v12  ;;  %171 = vmatmul.bf16.gmra.mxu1 %v388_v13 }
  0x32   :  { %181 = vmatmul.bf16.gmra.mxu2 %v390_v14  ;;  %191 = vmatmul.bf16.gmra.mxu3 %v392_v15 }
  0x9e   :  { %v157_v20 = vpop.f32.mrf.mxu0  ;;  %v167_v21 = vpop.f32.mrf.mxu1 }
  0x9f   :  { %v201_v22 = vmul.f32 %v547_v16, %v157_v20  ;;  %v205_v24 = vmul.f32 %v547_v16, %v167_v21 }
  0xa1   :  { %v221_v26 = vadd.f32 %v558_v19, %v201_v22  ;;  %v225_v27 = vadd.f32 %v558_v19, %v205_v24 }
  0xa3   :  { %v269_v28 = vadd.f32 %v403_v23, %v221_v26  ;;  %v273_v29 = vadd.f32 %v411_v25, %v225_v27  ;;  %v423_v27 = vunpack.c.l.bf16 %v437_v17 }
  0xa5   :  { %v285_v32 = vmax.f32 %v269_v28, 0.0  ;;  %v289_v33 = vmax.f32 %v273_v29, 0.0  ;;  %v177_v34 = vpop.f32.mrf.mxu2  ;;  %v187_v35 = vpop.f32.mrf.mxu3  ;;  %v431_v29 = vunpack.c.l.bf16 %v439_v18 }
  0xa6   :  { %v209_v36 = vmul.f32 %v547_v16, %v177_v34  ;;  %v213_v38 = vmul.f32 %v547_v16, %v187_v35  ;;  %v159_v40 = vpop.f32.mrf.mxu0  ;;  %v169_v41 = vpop.f32.mrf.mxu1  ;;  %v416_v35 = vunpack.c.h.bf16 %v435_v57 }
  0xa7   :  { %301 = vst [vmem:[%s663_s5] sm:$0xff] %v285_v32  ;;  %v202_v42 = vmul.f32 %v547_v16, %v159_v40  ;;  %v206_v44 = vmul.f32 %v547_v16, %v169_v41 }
  0xa8   :  { %305 = vst [vmem:[%s663_s5 + $0x20] sm:$0xff] %v289_v33  ;;  %v229_v46 = vadd.f32 %v558_v19, %v209_v36  ;;  %v233_v47 = vadd.f32 %v558_v19, %v213_v38  ;;  %v408_v33 = vunpack.c.h.bf16 %v433_v56 }
  0xa9   :  { %v222_v48 = vadd.f32 %v558_v19, %v202_v42  ;;  %v226_v49 = vadd.f32 %v558_v19, %v206_v44 }
  0xaa   :  { %v277_v50 = vadd.f32 %v419_v37, %v229_v46  ;;  %v281_v51 = vadd.f32 %v427_v39, %v233_v47 }
  0xab   :  { %v270_v52 = vadd.f32 %v404_v43, %v222_v48  ;;  %v274_v53 = vadd.f32 %v412_v45, %v226_v49 }
  0xac   :  { %v293_v54 = vmax.f32 %v277_v50, 0.0  ;;  %v297_v55 = vmax.f32 %v281_v51, 0.0  ;;  %v424_v51 = vunpack.c.h.bf16 %v437_v17 }
  0xad   :  { %v286_v58 = vmax.f32 %v270_v52, 0.0  ;;  %v290_v59 = vmax.f32 %v274_v53, 0.0  ;;  %v179_v60 = vpop.f32.mrf.mxu2  ;;  %v189_v61 = vpop.f32.mrf.mxu3  ;;  %v432_v53 = vunpack.c.h.bf16 %v439_v18 }
  0xae   :  { %309 = vst [vmem:[%s663_s5 + $0x40] sm:$0xff] %v293_v54  ;;  %v210_v62 = vmul.f32 %v547_v16, %v179_v60  ;;  %v214_v0 = vmul.f32 %v547_v16, %v189_v61  ;;  %v162_v2 = vpop.f32.mrf.mxu0  ;;  %v172_v3 = vpop.f32.mrf.mxu1 }
  0xaf   :  { %313 = vst [vmem:[%s663_s5 + $0x60] sm:$0xff] %v297_v55  ;;  %v203_v4 = vmul.f32 %v547_v16, %v162_v2  ;;  %v207_v6 = vmul.f32 %v547_v16, %v172_v3 }
  0xb0   :  { %302 = vst [vmem:[%s663_s5 + $0x8] sm:$0xff] %v286_v58  ;;  %v230_v8 = vadd.f32 %v558_v19, %v210_v62  ;;  %v234_v9 = vadd.f32 %v558_v19, %v214_v0 }
  0xb1   :  { %306 = vst [vmem:[%s663_s5 + $0x28] sm:$0xff] %v290_v59  ;;  %v223_v10 = vadd.f32 %v558_v19, %v203_v4  ;;  %v227_v11 = vadd.f32 %v558_v19, %v207_v6 }
  0xb2   :  { %v278_v12 = vadd.f32 %v420_v63, %v230_v8  ;;  %v282_v13 = vadd.f32 %v428_v1, %v234_v9 }
  0xb3   :  { %v271_v14 = vadd.f32 %v407_v5, %v223_v10  ;;  %v275_v15 = vadd.f32 %v415_v7, %v227_v11 }
  0xb4   :  { %v294_v20 = vmax.f32 %v278_v12, 0.0  ;;  %v298_v21 = vmax.f32 %v282_v13, 0.0 }
  0xb5   :  { %v287_v22 = vmax.f32 %v271_v14, 0.0  ;;  %v291_v23 = vmax.f32 %v275_v15, 0.0  ;;  %v182_v24 = vpop.f32.mrf.mxu2  ;;  %v192_v25 = vpop.f32.mrf.mxu3 }
  0xb6   :  { %310 = vst [vmem:[%s663_s5 + $0x48] sm:$0xff] %v294_v20  ;;  %v211_v26 = vmul.f32 %v547_v16, %v182_v24  ;;  %v215_v28 = vmul.f32 %v547_v16, %v192_v25  ;;  %v164_v30 = vpop.f32.mrf.mxu0  ;;  %v174_v31 = vpop.f32.mrf.mxu1 }
  0xb7   :  { %314 = vst [vmem:[%s663_s5 + $0x68] sm:$0xff] %v298_v21  ;;  %v204_v32 = vmul.f32 %v547_v16, %v164_v30  ;;  %v208_v34 = vmul.f32 %v547_v16, %v174_v31 }
  0xb8   :  { %303 = vst [vmem:[%s663_s5 + $0x10] sm:$0xff] %v287_v22  ;;  %v231_v36 = vadd.f32 %v558_v19, %v211_v26  ;;  %v235_v37 = vadd.f32 %v558_v19, %v215_v28 }
  0xb9   :  { %307 = vst [vmem:[%s663_s5 + $0x30] sm:$0xff] %v291_v23  ;;  %v224_v38 = vadd.f32 %v558_v19, %v204_v32  ;;  %v228_v39 = vadd.f32 %v558_v19, %v208_v34 }
  0xba   :  { %v279_v40 = vadd.f32 %v423_v27, %v231_v36  ;;  %v283_v41 = vadd.f32 %v431_v29, %v235_v37 }
  0xbb   :  { %v272_v42 = vadd.f32 %v408_v33, %v224_v38  ;;  %v276_v43 = vadd.f32 %v416_v35, %v228_v39 }
  0xbc   :  { %v295_v44 = vmax.f32 %v279_v40, 0.0  ;;  %v299_v45 = vmax.f32 %v283_v41, 0.0 }
  0xbd   :  { %v288_v46 = vmax.f32 %v272_v42, 0.0  ;;  %v292_v47 = vmax.f32 %v276_v43, 0.0  ;;  %v184_v48 = vpop.f32.mrf.mxu2  ;;  %v194_v49 = vpop.f32.mrf.mxu3 }
  0xbe   :  { %311 = vst [vmem:[%s663_s5 + $0x50] sm:$0xff] %v295_v44  ;;  %v212_v50 = vmul.f32 %v547_v16, %v184_v48  ;;  %v216_v52 = vmul.f32 %v547_v16, %v194_v49 }
  0xbf   :  { %315 = vst [vmem:[%s663_s5 + $0x70] sm:$0xff] %v299_v45 }
  0xc0   :  { %304 = vst [vmem:[%s663_s5 + $0x18] sm:$0xff] %v288_v46  ;;  %v232_v54 = vadd.f32 %v558_v19, %v212_v50  ;;  %v236_v55 = vadd.f32 %v558_v19, %v216_v52 }
  0xc1   :  { %308 = vst [vmem:[%s663_s5 + $0x38] sm:$0xff] %v292_v47 }
  0xc2   :  { %v280_v56 = vadd.f32 %v424_v51, %v232_v54  ;;  %v284_v57 = vadd.f32 %v432_v53, %v236_v55 }
  0xc4   :  { %v296_v16 = vmax.f32 %v280_v56, 0.0  ;;  %v300_v58 = vmax.f32 %v284_v57, 0.0 }
  0xc6   :  { %312 = vst [vmem:[%s663_s5 + $0x58] sm:$0xff] %v296_v16 }
  0xc7   :  { %316 = vst [vmem:[%s663_s5 + $0x78] sm:$0xff] %v300_v58 }

</bundles_post_ra>
